<compile_context>
chip_gen: v7x
topology: tpu7x:2x2x1
jax: 0.10.0
libtpu: 0.0.40
codegen_flags: <defaults>
</compile_context>

<pallas_src>
import functools
import math

import jax
import jax.numpy as jnp
from jax.experimental import pallas as pl
from jax.experimental.pallas import tpu as pltpu


def _pick_row_tile(n, max_tile):
    """Largest row tile <= max_tile that divides n and satisfies the (8, 128)
    sublane rule (multiple of 8, or the full dimension)."""
    if n <= max_tile:
        return n
    t = (max_tile // 8) * 8
    while t >= 8:
        if n % t == 0:
            return t
        t -= 8
    return n


def _relation_fc_kernel(pe_ref, wfc_ref, bfc_ref, law_ref):
    """relation_fc for all G groups at once, as a single MXU matmul.

    pe_ref : (TR, E)   a row-tile of position_embedding.reshape(N*M, E)
    wfc_ref: (E, G)
    bfc_ref: (1, G)
    law_ref: (TR, G)   log(max(pe @ wfc + bfc, 1e-3))   (ReLU subsumed by max)
    """
    pos = jnp.dot(pe_ref[...], wfc_ref[...],
                  preferred_element_type=jnp.float32) + bfc_ref[...]
    law_ref[...] = jnp.log(jnp.maximum(pos, 0.001)).astype(law_ref.dtype)


def _relation_attn_kernel(law_ref, roi_ref, v_ref, kt_ref,
                          wq_ref, bq_ref, wc_ref, bc_ref, out_ref, *,
                          group, dim_group, out_per_group):
    """One (TN, D) roi tile per grid step; G relation groups unrolled inside.

    law_ref: (G, TN, M)   log-clamped relation_fc output (per group, lane=M)
    roi_ref: (TN, D)      roi feature tile
    v_ref  : (M, D)       nongt roi features (v_data)
    kt_ref : (G, dg, M)   per-group transposed K projection (precomputed once)
    wq_ref : (D, D)       relation_fc2 weight, pre-scaled by 1/sqrt(dg)
    bq_ref : (1, D)       relation_fc2 bias,  pre-scaled by 1/sqrt(dg)
    wc_ref : (G, D, opg)  grouped 1x1 conv weight per group
    bc_ref : (G, 1, opg)  grouped 1x1 conv bias per group
    out_ref: (TN, D)      lane-dense output block in final channel order
    """
    roi = roi_ref[...]                                   # (TN, D)
    v = v_ref[...]                                       # (M, D)

    # Full-width Q projection on the MXU (scale already folded into wq/bq).
    q = jnp.dot(roi, wq_ref[...],
                preferred_element_type=jnp.float32) + bq_ref[...]   # (TN, D)

    for g in range(group):                               # small static unroll
        q_g = q[:, g * dim_group:(g + 1) * dim_group]    # (TN, dg)
        aff = jnp.dot(q_g, kt_ref[g],
                      preferred_element_type=jnp.float32)            # (TN, M)

        # weighted logits + softmax over the nongt axis
        w = law_ref[g] + aff
        m = jnp.max(w, axis=-1, keepdims=True)
        e = jnp.exp(w - m)
        s = jnp.sum(e, axis=-1, keepdims=True)
        p = e * pl.reciprocal(s, approx=True)            # EUP, not a VALU div

        # aggregate values, then this group's slice of the grouped 1x1 conv
        agg = jnp.dot(p.astype(v.dtype), v,
                      preferred_element_type=jnp.float32)             # (TN, D)
        y = jnp.dot(agg, wc_ref[g],
                    preferred_element_type=jnp.float32) + bc_ref[g]   # (TN, opg)

        out_ref[:, g * out_per_group:(g + 1) * out_per_group] = \
            y.astype(out_ref.dtype)


def relation_module_forward(roi_feat, position_embedding, params, *,
                            nongt_dim, fc_dim, feat_dim, dim, group,
                            row_tile=None):
    assert dim[0] == dim[1], "Matrix multiply requires same dimensions!"
    assert fc_dim == group
    N, D = roi_feat.shape
    M = nongt_dim
    E = position_embedding.shape[2]
    G = group
    dg = dim[0] // group
    assert G * dg == D and feat_dim == D
    opg = D // fc_dim                      # grouped-conv output channels/group

    inv_sqrt_dg = 1.0 / math.sqrt(float(dim[1] // group))
    v = roi_feat[:M]                       # nongt_roi_feat (== v_data)

    # ---- pre-pass (Pallas): relation_fc for all groups as one MXU matmul ----
    pe2d = position_embedding.reshape(N * M, E)          # lane-dense 2-D view
    wfc = params['wfc'].astype(jnp.float32)              # (E, G)
    bfc = params['bfc'].astype(jnp.float32).reshape(1, G)
    TR = _pick_row_tile(N * M, 512)
    law2d = pl.pallas_call(
        _relation_fc_kernel,
        out_shape=jax.ShapeDtypeStruct((N * M, G), jnp.float32),
        grid=(N * M // TR,),
        in_specs=[
            pl.BlockSpec((TR, E), lambda i: (i, 0)),
            pl.BlockSpec((E, G), lambda i: (0, 0)),
            pl.BlockSpec((1, G), lambda i: (0, 0)),
        ],
        out_specs=pl.BlockSpec((TR, G), lambda i: (i, 0)),
        compiler_params=pltpu.CompilerParams(dimension_semantics=("parallel",)),
    )(pe2d, wfc, bfc)
    # glue: (N*M, G) -> (G, N, M) so the main kernel reads (TN, M) per group
    law = law2d.reshape(N, M, G).transpose(2, 0, 1)

    # ---- glue (tiny): K projection computed exactly once, per-group transposed
    k_all = (v @ params['wfc3'] + params['bfc3']).astype(jnp.float32)  # (M, D)
    kt = k_all.reshape(M, G, dg).transpose(1, 2, 0)                    # (G, dg, M)

    # fold 1/sqrt(dg) into the Q projection (removes a per-group (N,M) multiply)
    wq = (params['wfc2'] * inv_sqrt_dg).astype(jnp.float32)            # (D, D)
    bq = (params['bfc2'] * inv_sqrt_dg).reshape(1, D).astype(jnp.float32)

    # grouped 1x1 conv weights, per-group layout
    wc = params['wconv'].reshape(G, opg, D).transpose(0, 2, 1).astype(jnp.float32)
    bc = params['bconv'].reshape(G, 1, opg).astype(jnp.float32)

    if row_tile is None:
        TN = _pick_row_tile(N, 128)
    else:
        TN = row_tile
    assert N % TN == 0, "row_tile must divide N"
    assert TN == N or TN % 8 == 0, "row_tile must be a multiple of 8"

    kernel = functools.partial(_relation_attn_kernel,
                               group=G, dim_group=dg, out_per_group=opg)

    out = pl.pallas_call(
        kernel,
        out_shape=jax.ShapeDtypeStruct((N, D), jnp.float32),
        grid=(N // TN,),
        in_specs=[
            pl.BlockSpec((G, TN, M), lambda i: (0, i, 0)),   # log aff_weight
            pl.BlockSpec((TN, D), lambda i: (i, 0)),         # roi_feat tile
            pl.BlockSpec((M, D), lambda i: (0, 0)),          # v_data
            pl.BlockSpec((G, dg, M), lambda i: (0, 0, 0)),   # K^T per group
            pl.BlockSpec((D, D), lambda i: (0, 0)),          # wq (scaled)
            pl.BlockSpec((1, D), lambda i: (0, 0)),          # bq (scaled)
            pl.BlockSpec((G, D, opg), lambda i: (0, 0, 0)),  # grouped conv W
            pl.BlockSpec((G, 1, opg), lambda i: (0, 0, 0)),  # grouped conv b
        ],
        out_specs=pl.BlockSpec((TN, D), lambda i: (i, 0)),   # lane-dense (TN,D)
        compiler_params=pltpu.CompilerParams(
            dimension_semantics=("parallel",),               # N axis -> megacore
            vmem_limit_bytes=48 * 1024 * 1024),
    )(law, roi_feat, v, kt, wq, bq, wc, bc)
    return out


def reference_forward(roi_feat, position_embedding, params, *,
                      nongt_dim, fc_dim, feat_dim, dim, group):
    """Plain-JAX mirror of the PyTorch forward, used only for verification."""
    dg = dim[0] // group
    N = roi_feat.shape[0]
    v = roi_feat[:nongt_dim]
    pe = position_embedding
    per = pe.reshape(-1, pe.shape[2]).astype(jnp.float32)
    pos1 = jnp.maximum(per @ params['wfc'] + params['bfc'], 0.0)
    aff_weight = pos1.reshape(-1, pe.shape[1], fc_dim).transpose(0, 2, 1)   # (N, fc_dim, M)
    q = roi_feat @ params['wfc2'] + params['bfc2']
    qb = q.reshape(-1, group, dg).transpose(1, 0, 2)
    k = v @ params['wfc3'] + params['bfc3']
    kb = k.reshape(-1, group, dg).transpose(1, 0, 2)
    aff = jnp.einsum('gnd,gmd->gnm', qb, kb) * (1.0 / math.sqrt(float(dim[1] // group)))
    aff = aff.transpose(1, 0, 2)                                            # (N, group, M)
    w = jnp.log(jnp.maximum(aff_weight, 0.001)) + aff
    sm = jax.nn.softmax(w, axis=2)
    out_t = sm.reshape(-1, sm.shape[2]) @ v                                 # (N*group, feat)
    xg = out_t.reshape(N, fc_dim, feat_dim)
    opg = params['wconv'].shape[0] // fc_dim
    wg = params['wconv'].reshape(fc_dim, opg, feat_dim)
    out = jnp.einsum('ngf,gof->ngo', xg, wg).reshape(N, fc_dim * opg) + params['bconv']
    return out


def init_params(key, E, G, D):
    ks = jax.random.split(key, 8)

    def lin(k, fan_in, shape):
        return jax.random.uniform(k, shape, jnp.float32, -1.0, 1.0) / math.sqrt(float(fan_in))

    return dict(
        wfc=lin(ks[0], E, (E, G)),   bfc=lin(ks[1], E, (G,)),      # relation_fc
        wfc2=lin(ks[2], D, (D, D)),  bfc2=lin(ks[3], D, (D,)),     # relation_fc2
        wfc3=lin(ks[4], D, (D, D)),  bfc3=lin(ks[5], D, (D,)),     # relation_fc3
        wconv=lin(ks[6], D, (D, D)), bconv=lin(ks[7], D, (D,)),    # relation_conv1
    )


if __name__ == "__main__":
    # Small, consistent shapes: N rois, nongt_dim=M, emb_ft_dim=E,
    # output_dim=feat_dim=D, fc_dim=group=G, dim=(D, D, D).
    N, M, E, D, G = 16, 8, 8, 64, 4
    fc_dim, feat_dim, dim, group = G, D, (D, D, D), G

    key = jax.random.PRNGKey(0)
    k1, k2, k3 = jax.random.split(key, 3)
    roi_feat = jax.random.normal(k1, (N, D), jnp.float32) * 0.5
    position_embedding = jax.random.normal(k2, (N, M, E), jnp.float32)
    params = init_params(k3, E, G, D)

    out = relation_module_forward(roi_feat, position_embedding, params,
                                  nongt_dim=M, fc_dim=fc_dim, feat_dim=feat_dim,
                                  dim=dim, group=group, row_tile=8)
    out = jax.block_until_ready(out)

    ref = reference_forward(roi_feat, position_embedding, params,
                            nongt_dim=M, fc_dim=fc_dim, feat_dim=feat_dim,
                            dim=dim, group=group)
    assert out.shape == (N, D), out.shape
    max_err = float(jnp.max(jnp.abs(out - ref)))
    assert jnp.allclose(out, ref, atol=2e-2, rtol=2e-2), f"max_err={max_err}"
    print("KERNEL_OK")
</pallas_src>

<mosaic_0001>
module attributes {stable_mosaic.version = 11 : i64} {
  func.func @_relation_fc_kernel(%arg0: i32, %arg1: memref<128x8xf32, #tpu.memory_space<vmem>>, %arg2: memref<8x4xf32, #tpu.memory_space<vmem>>, %arg3: memref<1x4xf32, #tpu.memory_space<vmem>>, %arg4: memref<128x4xf32, #tpu.memory_space<vmem>>) attributes {dimension_semantics = [#tpu.dimension_semantics<parallel>], iteration_bounds = array<i64: 1>, scalar_prefetch = 0 : i64, scratch_operands = 0 : i64, tpu.core_type = #tpu.core_type<tc>, window_params = [{transform_indices = @transform_0, window_bounds = array<i64: 128, 8>}, {pipeline_mode = #tpu.pipeline_mode<synchronous>, transform_indices = @transform_1, window_bounds = array<i64: 8, 4>}, {pipeline_mode = #tpu.pipeline_mode<synchronous>, transform_indices = @transform_2, window_bounds = array<i64: 1, 4>}, {transform_indices = @transform_3, window_bounds = array<i64: 128, 4>}]} {
    %c0 = arith.constant 0 : index
    %c0_0 = arith.constant 0 : index
    %0 = vector.load %arg1[%c0, %c0_0] : memref<128x8xf32, #tpu.memory_space<vmem>>, vector<128x8xf32>
    %c0_1 = arith.constant 0 : index
    %c0_2 = arith.constant 0 : index
    %1 = vector.load %arg2[%c0_1, %c0_2] : memref<8x4xf32, #tpu.memory_space<vmem>>, vector<8x4xf32>
    %cst = arith.constant dense<0.000000e+00> : vector<128x4xf32>
    %2 = tpu.matmul %0, %1, %cst {dimension_numbers = #tpu.dot_dimension_numbers<[1], [0], [0], [1], [0, 0, 1, 1], [], []>} : vector<128x8xf32>, vector<8x4xf32>, vector<128x4xf32> -> vector<128x4xf32>
    %c0_3 = arith.constant 0 : index
    %c0_4 = arith.constant 0 : index
    %3 = vector.load %arg3[%c0_3, %c0_4] : memref<1x4xf32, #tpu.memory_space<vmem>>, vector<1x4xf32>
    %4 = vector.broadcast %3 : vector<1x4xf32> to vector<128x4xf32>
    %5 = arith.addf %2, %4 : vector<128x4xf32>
    %cst_5 = arith.constant 1.000000e-03 : f32
    %6 = vector.broadcast %cst_5 : f32 to vector<128x4xf32>
    %7 = arith.maximumf %5, %6 : vector<128x4xf32>
    %8 = math.log %7 : vector<128x4xf32>
    %c0_6 = arith.constant 0 : index
    %c0_7 = arith.constant 0 : index
    %9 = vector.load %arg4[%c0_6, %c0_7] : memref<128x4xf32, #tpu.memory_space<vmem>>, vector<128x4xf32>
    tpu.vector_store %arg4[%c0_6, %c0_7], %8 {strides = array<i32>} : memref<128x4xf32, #tpu.memory_space<vmem>>, vector<128x4xf32>,
    return
  }
  func.func @transform_0(%arg0: i32) -> (i32, i32) {
    %c0_i32 = arith.constant 0 : i32
    %c0_i32_0 = arith.constant 0 : i32
    return %arg0, %c0_i32 : i32, i32
  }
  func.func @transform_1(%arg0: i32) -> (i32, i32) {
    %c0_i32 = arith.constant 0 : i32
    %c0_i32_0 = arith.constant 0 : i32
    %c0_i32_1 = arith.constant 0 : i32
    return %c0_i32, %c0_i32_0 : i32, i32
  }
  func.func @transform_2(%arg0: i32) -> (i32, i32) {
    %c0_i32 = arith.constant 0 : i32
    %c0_i32_0 = arith.constant 0 : i32
    %c0_i32_1 = arith.constant 0 : i32
    return %c0_i32, %c0_i32_0 : i32, i32
  }
  func.func @transform_3(%arg0: i32) -> (i32, i32) {
    %c0_i32 = arith.constant 0 : i32
    %c0_i32_0 = arith.constant 0 : i32
    return %arg0, %c0_i32 : i32, i32
  }
}

</mosaic_0001>

<bundles_post_ra>
// kernel: tpu_custom_call.1
= control target key start
LH: loop header
LB: loop body
LE: loop exit
PB: predicated region body
PF: predicated region fallthrough
CT: control target
= control target key end

     0   :  { %vm38_vm0 = vcmask 64512   ;;  %vm280_vm1 = vcmask 31744   ;;  %s549_s1 = inlined_call_operand.vmem [shape: f32[8,4], index: 1, kind: input, shape index: {}]   ;;  %s550_s0 = inlined_call_operand.vmem [shape: f32[128,8], index: 0, kind: input, shape index: {}]   ;;  %s551_s2 = inlined_call_operand.vmem [shape: f32[1,4], index: 2, kind: input, shape index: {}]   ;;  %s552_s3 = inlined_call_operand.vmem [shape: f32[128,4], index: 3, kind: output, shape index: {}]  }
   0x1   :  { %v30_v0 = vld [vmem:[%s549_s1] sm:$0xff]  ;;  %v15_v3 = vld [vmem:[%s550_s0 + $0x8] sm:$0xff]  ;;  %v16_v5 = vld [vmem:[%s550_s0 + $0x10] sm:$0xff] }
   0x2   :  { %v14_v1 = vld [vmem:[%s550_s0] sm:$0xff]  ;;  %335 = vmatprep.subr.mxu0 %v30_v0  ;;  %361 = vmatprep.subr.mxu1 %v30_v0  ;;  %v23_v4 = vld [vmem:[%s550_s0 + $0x48] sm:$0xff]  ;;  %v24_v6 = vld [vmem:[%s550_s0 + $0x50] sm:$0xff] }
   0x3   :  { %v22_v2 = vld [vmem:[%s550_s0 + $0x40] sm:$0xff]  ;;  %336 = vmatpush3.msra.mxu0 %v30_v0  ;;  %362 = vmatpush3.msra.mxu1 %v30_v0  ;;  %v17_v7 = vld [vmem:[%s550_s0 + $0x18] sm:$0xff]  ;;  %v19_v11 = vld [vmem:[%s550_s0 + $0x28] sm:$0xff] }
   0x4   :  { %337 = vmatprep.mubr.msk.f32.mxu0 %vm38_vm0, %v14_v1  ;;  %349 = vmatprep.mubr.msk.f32.mxu1 %vm38_vm0, %v22_v2  ;;  %v25_v8 = vld [vmem:[%s550_s0 + $0x58] sm:$0xff]  ;;  %v18_v9 = vld [vmem:[%s550_s0 + $0x20] sm:$0xff]  ;;  %v27_v12 = vld [vmem:[%s550_s0 + $0x68] sm:$0xff] }
   0x5   :  { %338 = vmatmul.mubr.msk.f32.vlgmr.msra.gmra.mrb[0].mxu0 %vm38_vm0, %v15_v3  ;;  %350 = vmatmul.mubr.msk.f32.vlgmr.msra.gmra.mrb[0].mxu1 %vm38_vm0, %v23_v4  ;;  %v26_v10 = vld [vmem:[%s550_s0 + $0x60] sm:$0xff]  ;;  %v20_v13 = vld [vmem:[%s550_s0 + $0x30] sm:$0xff]  ;;  %v21_v15 = vld [vmem:[%s550_s0 + $0x38] sm:$0xff] }
   0x6   :  { %340 = vmatprep.mubr.msk.f32.mxu0 %vm38_vm0, %v16_v5  ;;  %352 = vmatprep.mubr.msk.f32.mxu1 %vm38_vm0, %v24_v6  ;;  %v28_v14 = vld [vmem:[%s550_s0 + $0x70] sm:$0xff]  ;;  %v29_v16 = vld [vmem:[%s550_s0 + $0x78] sm:$0xff]  ;;  %v301_v17 = vld [vmem:[%s551_s2] ss:$0 sm:$0xff] }
   0x9   :  { %341 = vmatmul.mubr.msk.f32.gmra.mrb[2].mxu0 %vm38_vm0, %v17_v7  ;;  %353 = vmatmul.mubr.msk.f32.gmra.mrb[2].mxu1 %vm38_vm0, %v25_v8 }
   0xa   :  { %343 = vmatprep.mubr.msk.f32.mxu0 %vm38_vm0, %v18_v9  ;;  %355 = vmatprep.mubr.msk.f32.mxu1 %vm38_vm0, %v26_v10 }
   0xd   :  { %344 = vmatmul.mubr.msk.f32.gmra.mrb[4].mxu0 %vm38_vm0, %v19_v11  ;;  %356 = vmatmul.mubr.msk.f32.gmra.mrb[4].mxu1 %vm38_vm0, %v27_v12 }
   0xe   :  { %346 = vmatprep.mubr.msk.f32.mxu0 %vm38_vm0, %v20_v13  ;;  %358 = vmatprep.mubr.msk.f32.mxu1 %vm38_vm0, %v28_v14 }
  0x11   :  { %347 = vmatmul.mubr.msk.f32.gmra.mrb[6].mxu0 %vm38_vm0, %v21_v15  ;;  %359 = vmatmul.mubr.msk.f32.gmra.mrb[6].mxu1 %vm38_vm0, %v29_v16 }
  0xd8   :  { %v339_v18 = vpop.f32.mrb[0].mxu0  ;;  %v351_v19 = vpop.f32.mrb[0].mxu1 }
  0xd9   :  { %v159_v20 = vadd.f32 %v339_v18, %v301_v17  ;;  %v199_v21 = vadd.f32 %v351_v19, %v301_v17  ;;  %v153_v22 = vpop.f32.mrb[1].mxu0  ;;  %v193_v23 = vpop.f32.mrb[1].mxu1 }
  0xda   :  { %v154_v24 = vadd.f32 %v301_v17, %v153_v22  ;;  %v194_v25 = vadd.f32 %v301_v17, %v193_v23 }
  0xdb   :  { %v233_v26 = vmax.f32 %v159_v20, 0.001  ;;  %v241_v27 = vmax.f32 %v199_v21, 0.001 }
  0xdc   :  { %v232_v28 = vmax.f32 %v154_v24, 0.001  ;;  %v240_v29 = vmax.f32 %v194_v25, 0.001  ;;  %v342_v30 = vpop.f32.mrb[2].mxu0  ;;  %v354_v31 = vpop.f32.mrb[2].mxu1 }
  0xdd   :  { %363 = vlog2.f32 %v233_v26  ;;  %v169_v32 = vadd.f32 %v342_v30, %v301_v17  ;;  %v209_v33 = vadd.f32 %v354_v31, %v301_v17  ;;  %v163_v34 = vpop.f32.mrb[3].mxu0  ;;  %v203_v35 = vpop.f32.mrb[3].mxu1 }
  0xde   :  { %365 = vlog2.f32 %v241_v27  ;;  %v164_v36 = vadd.f32 %v301_v17, %v163_v34  ;;  %v204_v37 = vadd.f32 %v301_v17, %v203_v35 }
  0xdf   :  { %367 = vlog2.f32 %v232_v28  ;;  %v235_v38 = vmax.f32 %v169_v32, 0.001  ;;  %v243_v39 = vmax.f32 %v209_v33, 0.001 }
  0xe0   :  { %369 = vlog2.f32 %v240_v29  ;;  %v234_v40 = vmax.f32 %v164_v36, 0.001  ;;  %v242_v41 = vmax.f32 %v204_v37, 0.001  ;;  %v345_v42 = vpop.f32.mrb[4].mxu0  ;;  %v357_v43 = vpop.f32.mrb[4].mxu1 }
  0xe1   :  { %371 = vlog2.f32 %v235_v38  ;;  %v179_v44 = vadd.f32 %v345_v42, %v301_v17  ;;  %v219_v45 = vadd.f32 %v357_v43, %v301_v17  ;;  %v173_v46 = vpop.f32.mrb[5].mxu0  ;;  %v213_v47 = vpop.f32.mrb[5].mxu1 }
  0xe2   :  { %373 = vlog2.f32 %v243_v39  ;;  %v174_v48 = vadd.f32 %v301_v17, %v173_v46  ;;  %v214_v49 = vadd.f32 %v301_v17, %v213_v47 }
  0xe3   :  { %375 = vlog2.f32 %v234_v40  ;;  %v237_v50 = vmax.f32 %v179_v44, 0.001  ;;  %v245_v51 = vmax.f32 %v219_v45, 0.001 }
  0xe4   :  { %377 = vlog2.f32 %v242_v41  ;;  %v236_v52 = vmax.f32 %v174_v48, 0.001  ;;  %v244_v53 = vmax.f32 %v214_v49, 0.001  ;;  %v348_v54 = vpop.f32.mrb[6].mxu0  ;;  %v360_v55 = vpop.f32.mrb[6].mxu1 }
  0xe5   :  { %379 = vlog2.f32 %v237_v50  ;;  %v189_v56 = vadd.f32 %v348_v54, %v301_v17  ;;  %v229_v57 = vadd.f32 %v360_v55, %v301_v17  ;;  %v183_v58 = vpop.f32.mrb[7].mxu0  ;;  %v223_v59 = vpop.f32.mrb[7].mxu1 }
  0xe6   :  { %381 = vlog2.f32 %v245_v51  ;;  %v184_v60 = vadd.f32 %v301_v17, %v183_v58  ;;  %v224_v61 = vadd.f32 %v301_v17, %v223_v59 }
  0xe7   :  { %v364_v62 = vpop.eup %363  ;;  %383 = vlog2.f32 %v236_v52  ;;  %v239_v63 = vmax.f32 %v189_v56, 0.001  ;;  %v247_v0 = vmax.f32 %v229_v57, 0.001 }
  0xe8   :  { %v366_v1 = vpop.eup %365  ;;  %v251_v2 = vmul.f32 0.6931472, %v364_v62  ;;  %385 = vlog2.f32 %v244_v53  ;;  %v238_v3 = vmax.f32 %v184_v60, 0.001  ;;  %v246_v4 = vmax.f32 %v224_v61, 0.001 }
  0xe9   :  { %v368_v5 = vpop.eup %367  ;;  %v267_v6 = vmul.f32 0.6931472, %v366_v1  ;;  %387 = vlog2.f32 %v239_v63 }
  0xea   :  { %v370_v7 = vpop.eup %369  ;;  %282 = vst.msk [vmem:[%s552_s3 + $0x8] sm:$0xff] %vm280_vm1, %v251_v2  ;;  %v249_v8 = vmul.f32 0.6931472, %v368_v5  ;;  %389 = vlog2.f32 %v247_v0 }
  0xeb   :  { %v372_v9 = vpop.eup %371  ;;  %290 = vst.msk [vmem:[%s552_s3 + $0x48] sm:$0xff] %vm280_vm1, %v267_v6  ;;  %v265_v10 = vmul.f32 0.6931472, %v370_v7  ;;  %391 = vlog2.f32 %v238_v3 }
  0xec   :  { %v374_v11 = vpop.eup %373  ;;  %281 = vst.msk [vmem:[%s552_s3] sm:$0xff] %vm280_vm1, %v249_v8  ;;  %v255_v12 = vmul.f32 0.6931472, %v372_v9  ;;  %393 = vlog2.f32 %v246_v4 }
  0xed   :  { %v376_v13 = vpop.eup %375  ;;  %289 = vst.msk [vmem:[%s552_s3 + $0x40] sm:$0xff] %vm280_vm1, %v265_v10  ;;  %v271_v14 = vmul.f32 0.6931472, %v374_v11 }
  0xee   :  { %v378_v15 = vpop.eup %377  ;;  %284 = vst.msk [vmem:[%s552_s3 + $0x18] sm:$0xff] %vm280_vm1, %v255_v12  ;;  %v253_v16 = vmul.f32 0.6931472, %v376_v13 }
  0xef   :  { %v380_v17 = vpop.eup %379  ;;  %292 = vst.msk [vmem:[%s552_s3 + $0x58] sm:$0xff] %vm280_vm1, %v271_v14  ;;  %v269_v18 = vmul.f32 0.6931472, %v378_v15 }
  0xf0   :  { %v382_v19 = vpop.eup %381  ;;  %283 = vst.msk [vmem:[%s552_s3 + $0x10] sm:$0xff] %vm280_vm1, %v253_v16  ;;  %v259_v20 = vmul.f32 0.6931472, %v380_v17 }
  0xf1   :  { %v384_v21 = vpop.eup %383  ;;  %291 = vst.msk [vmem:[%s552_s3 + $0x50] sm:$0xff] %vm280_vm1, %v269_v18  ;;  %v275_v22 = vmul.f32 0.6931472, %v382_v19 }
  0xf2   :  { %v386_v23 = vpop.eup %385  ;;  %286 = vst.msk [vmem:[%s552_s3 + $0x28] sm:$0xff] %vm280_vm1, %v259_v20  ;;  %v257_v24 = vmul.f32 0.6931472, %v384_v21 }
  0xf3   :  { %v388_v25 = vpop.eup %387  ;;  %294 = vst.msk [vmem:[%s552_s3 + $0x68] sm:$0xff] %vm280_vm1, %v275_v22  ;;  %v273_v26 = vmul.f32 0.6931472, %v386_v23 }
  0xf4   :  { %v390_v27 = vpop.eup %389  ;;  %285 = vst.msk [vmem:[%s552_s3 + $0x20] sm:$0xff] %vm280_vm1, %v257_v24  ;;  %v263_v28 = vmul.f32 0.6931472, %v388_v25 }
  0xf5   :  { %v392_v29 = vpop.eup %391  ;;  %293 = vst.msk [vmem:[%s552_s3 + $0x60] sm:$0xff] %vm280_vm1, %v273_v26  ;;  %v279_v30 = vmul.f32 0.6931472, %v390_v27 }
  0xf6   :  { %v394_v31 = vpop.eup %393  ;;  %288 = vst.msk [vmem:[%s552_s3 + $0x38] sm:$0xff] %vm280_vm1, %v263_v28  ;;  %v261_v32 = vmul.f32 0.6931472, %v392_v29 }
  0xf7   :  { %296 = vst.msk [vmem:[%s552_s3 + $0x78] sm:$0xff] %vm280_vm1, %v279_v30  ;;  %v277_v33 = vmul.f32 0.6931472, %v394_v31 }
  0xf8   :  { %287 = vst.msk [vmem:[%s552_s3 + $0x30] sm:$0xff] %vm280_vm1, %v261_v32 }
  0xf9   :  { %295 = vst.msk [vmem:[%s552_s3 + $0x70] sm:$0xff] %vm280_vm1, %v277_v33 }

</bundles_post_ra>
